<compile_context>
chip_gen: v5e
topology: v5e:2x2
jax: 0.10.0
libtpu: 0.0.40
codegen_flags: <defaults>
</compile_context>

<pallas_src>
import jax
import jax.numpy as jnp
from jax.experimental import pallas as pl
from jax.experimental.pallas import tpu as pltpu

# ----------------------------- model config (small, consistent with module) --
BATCH        = 2
MAX_LEN      = 16          # "max_len"
HIDDEN_DIM   = 32          # "hidden_dim"
NUM_CH       = 16          # "num_channels"
KERNEL_SIZES = (3, 4, 5)   # "kernel_size"
VOCAB_SIZE   = 50
NUM_CLASSES  = 10
CLASSES_PAD  = 128         # lane-dense padded class axis
PADDING_IDX  = 0
NEG_BIAS     = -1e9        # bias for padded class columns (vanishes in softmax)


def textcnn_kernel(ids_ref,                     # (B*L,) int32   SMEM (scalar prefetch)
                   table_ref,                   # (V, H)  f32    VMEM
                   w3_ref, b3_ref,              # (3H, C) bf16 / (1, C) f32
                   w4_ref, b4_ref,              # (4H, C) bf16 / (1, C) f32
                   w5_ref, b5_ref,              # (5H, C) bf16 / (1, C) f32
                   fcw_ref, fcb_ref,            # (3C, 128) bf16 / (1, 128) f32
                   out_ref,                     # (B, 128) f32
                   emb_scratch):                # (B*L, H) f32 VMEM scratch
    n_rows = BATCH * MAX_LEN

    # ---- embedding lookup: scalar-indexed row gather, table -> scratch ------
    for i in range(n_rows):
        tok = ids_ref[i]
        emb_scratch[pl.ds(i, 1), :] = table_ref[pl.ds(tok, 1), :]

    emb = emb_scratch[...]                       # (B*L, H) f32 (bf16-exact values)

    def conv_branch(w_ref, b_ref, k):
        # im2col over the flattened (B*L) time axis; rows whose window would
        # cross a batch boundary exist in `acc` but are never read by pooling.
        m_rows = n_rows - k + 1
        xk = jnp.concatenate([emb[dk:dk + m_rows, :] for dk in range(k)],
                             axis=1).astype(jnp.bfloat16)        # (m, k*H) bf16
        acc = jnp.dot(xk, w_ref[...],
                      preferred_element_type=jnp.float32)        # (m, C) f32
        l_out = MAX_LEN - k + 1
        pooled = jnp.concatenate(
            [jnp.max(acc[b * MAX_LEN: b * MAX_LEN + l_out, :],
                     axis=0, keepdims=True) for b in range(BATCH)],
            axis=0)                                              # (B, C) f32
        # bias + ReLU commute with the max over time (both monotone).
        return jnp.maximum(pooled + b_ref[...], 0.0)             # (B, C) f32

    f3 = conv_branch(w3_ref, b3_ref, KERNEL_SIZES[0])
    f4 = conv_branch(w4_ref, b4_ref, KERNEL_SIZES[1])
    f5 = conv_branch(w5_ref, b5_ref, KERNEL_SIZES[2])

    # TODO(synk): training-mode dropout (p=0.8) with PRNG masking is not
    # implemented; dropout is identity at inference time.

    # fc as three partial products against static slices of the fc weight
    # (avoids a lane-axis concat of the pooled features).
    fcw = fcw_ref[...]                                           # (3C, 128) bf16
    c = NUM_CH
    logits = (jnp.dot(f3.astype(jnp.bfloat16), fcw[0:c, :],
                      preferred_element_type=jnp.float32)
              + jnp.dot(f4.astype(jnp.bfloat16), fcw[c:2 * c, :],
                        preferred_element_type=jnp.float32)
              + jnp.dot(f5.astype(jnp.bfloat16), fcw[2 * c:3 * c, :],
                        preferred_element_type=jnp.float32)
              + fcb_ref[...])                                    # (B, 128) f32

    # log_softmax over the (padded) class axis; padded columns have zero
    # weights and -1e9 bias, so they vanish under exp().
    mx = jnp.max(logits, axis=1, keepdims=True)
    lse = jnp.log(jnp.sum(jnp.exp(logits - mx), axis=1, keepdims=True)) + mx
    out_ref[...] = logits - lse


def textcnn_forward(text, text_lengths, params):
    """text: (B, L) int32 token ids; text_lengths is unused (as in the spec)."""
    del text_lengths
    B, L = text.shape
    assert (B, L) == (BATCH, MAX_LEN)
    ids = text.reshape(-1).astype(jnp.int32)     # (B*L,) -> SMEM via scalar prefetch

    zmap2 = lambda i, ids_ref: (0, 0)            # everything is a single full block

    in_specs = [
        pl.BlockSpec((VOCAB_SIZE, HIDDEN_DIM), zmap2),                   # table
        pl.BlockSpec((KERNEL_SIZES[0] * HIDDEN_DIM, NUM_CH), zmap2),     # w3 (im2col)
        pl.BlockSpec((1, NUM_CH), zmap2),                                # b3
        pl.BlockSpec((KERNEL_SIZES[1] * HIDDEN_DIM, NUM_CH), zmap2),     # w4
        pl.BlockSpec((1, NUM_CH), zmap2),                                # b4
        pl.BlockSpec((KERNEL_SIZES[2] * HIDDEN_DIM, NUM_CH), zmap2),     # w5
        pl.BlockSpec((1, NUM_CH), zmap2),                                # b5
        pl.BlockSpec((len(KERNEL_SIZES) * NUM_CH, CLASSES_PAD), zmap2),  # fc w (padded)
        pl.BlockSpec((1, CLASSES_PAD), zmap2),                           # fc b (padded)
    ]
    out_spec = pl.BlockSpec((B, CLASSES_PAD), zmap2)

    out_pad = pl.pallas_call(
        textcnn_kernel,
        out_shape=jax.ShapeDtypeStruct((B, CLASSES_PAD), jnp.float32),
        grid_spec=pltpu.PrefetchScalarGridSpec(
            num_scalar_prefetch=1,
            grid=(1,),                           # single step: whole batch at once
            in_specs=in_specs,
            out_specs=out_spec,
            scratch_shapes=[pltpu.VMEM((B * L, HIDDEN_DIM), jnp.float32)],
        ),
        compiler_params=pltpu.CompilerParams(
            dimension_semantics=("arbitrary",)),
    )(ids,
      params["embedding"],
      params["w3"], params["b3"],
      params["w4"], params["b4"],
      params["w5"], params["b5"],
      params["fc_w_pad"], params["fc_b_pad"])

    return out_pad[:, :NUM_CLASSES]              # drop the lane padding


def init_params(key):
    """Deterministic synthetic parameters matching the module's shapes.

    Conv weights are stored in im2col layout (k*H, C) = torch (C,H,k) transposed
    and flattened; fc weight/bias are padded on the class axis to 128 lanes.
    All matmul operands are bf16 (values bf16-exact), biases stay f32.
    """
    ks = jax.random.split(key, 9)
    emb = 0.1 * jax.random.normal(ks[0], (VOCAB_SIZE, HIDDEN_DIM), jnp.float32)
    emb = emb.at[PADDING_IDX].set(0.0)           # padding_idx row is zero
    emb = emb.astype(jnp.bfloat16).astype(jnp.float32)   # bf16-exact values

    def conv_w(k, ksz):
        w = 0.1 * jax.random.normal(k, (ksz, HIDDEN_DIM, NUM_CH), jnp.float32)
        return w.reshape(ksz * HIDDEN_DIM, NUM_CH).astype(jnp.bfloat16)

    three_c = NUM_CH * len(KERNEL_SIZES)
    fc_w = 0.1 * jax.random.normal(ks[7], (three_c, NUM_CLASSES), jnp.float32)
    fc_w_pad = jnp.zeros((three_c, CLASSES_PAD), jnp.float32)
    fc_w_pad = fc_w_pad.at[:, :NUM_CLASSES].set(fc_w).astype(jnp.bfloat16)

    fc_b = 0.05 * jax.random.normal(ks[8], (1, NUM_CLASSES), jnp.float32)
    fc_b_pad = jnp.full((1, CLASSES_PAD), NEG_BIAS, jnp.float32)
    fc_b_pad = fc_b_pad.at[:, :NUM_CLASSES].set(fc_b)

    return {
        "embedding": emb,
        "w3": conv_w(ks[1], KERNEL_SIZES[0]),
        "b3": 0.05 * jax.random.normal(ks[2], (1, NUM_CH), jnp.float32),
        "w4": conv_w(ks[3], KERNEL_SIZES[1]),
        "b4": 0.05 * jax.random.normal(ks[4], (1, NUM_CH), jnp.float32),
        "w5": conv_w(ks[5], KERNEL_SIZES[2]),
        "b5": 0.05 * jax.random.normal(ks[6], (1, NUM_CH), jnp.float32),
        "fc_w_pad": fc_w_pad,
        "fc_b_pad": fc_b_pad,
    }


def reference_forward(text, params):
    """Pure-JAX reference mirroring the PyTorch semantics (for validation)."""
    emb = jnp.take(params["embedding"], text, axis=0)           # (B, L, H) f32

    def conv_block(w_flat, b, k):
        w = w_flat.astype(jnp.float32).reshape(k, HIDDEN_DIM, NUM_CH)
        l_out = MAX_LEN - k + 1
        acc = jnp.zeros((text.shape[0], l_out, NUM_CH), jnp.float32)
        for dk in range(k):
            acc = acc + jnp.einsum("blh,hc->blc", emb[:, dk:dk + l_out, :], w[dk])
        acc = jnp.maximum(acc + b[None, :, :], 0.0)
        return jnp.max(acc, axis=1)                             # (B, C)

    f3 = conv_block(params["w3"], params["b3"], KERNEL_SIZES[0])
    f4 = conv_block(params["w4"], params["b4"], KERNEL_SIZES[1])
    f5 = conv_block(params["w5"], params["b5"], KERNEL_SIZES[2])
    feat = jnp.concatenate([f3, f4, f5], axis=1)                # (B, 3C)
    feat = feat.astype(jnp.bfloat16).astype(jnp.float32)        # mirror kernel fc input
    fcw = params["fc_w_pad"][:, :NUM_CLASSES].astype(jnp.float32)
    fcb = params["fc_b_pad"][:, :NUM_CLASSES]
    logits = feat @ fcw + fcb
    return jax.nn.log_softmax(logits, axis=1)


if __name__ == "__main__":
    key = jax.random.PRNGKey(0)
    k_param, k_text, k_len = jax.random.split(key, 3)

    params = init_params(k_param)
    text = jax.random.randint(k_text, (BATCH, MAX_LEN), 0, VOCAB_SIZE, jnp.int32)
    text_lengths = jax.random.randint(k_len, (BATCH,), 1, MAX_LEN + 1, jnp.int32)

    out = jax.block_until_ready(textcnn_forward(text, text_lengths, params))
    ref = jax.block_until_ready(reference_forward(text, params))

    assert out.shape == (BATCH, NUM_CLASSES)
    assert jnp.allclose(out, ref, atol=1e-3, rtol=1e-3), "mismatch vs JAX reference"

    print("KERNEL_OK")
</pallas_src>

<mosaic_0001>
module attributes {stable_mosaic.version = 11 : i64} {
  func.func @textcnn_kernel(%arg0: i32, %arg1: memref<32xi32, #tpu.memory_space<smem>>, %arg2: memref<50x32xf32, #tpu.memory_space<vmem>>, %arg3: memref<96x16xbf16, #tpu.memory_space<vmem>>, %arg4: memref<1x16xf32, #tpu.memory_space<vmem>>, %arg5: memref<128x16xbf16, #tpu.memory_space<vmem>>, %arg6: memref<1x16xf32, #tpu.memory_space<vmem>>, %arg7: memref<160x16xbf16, #tpu.memory_space<vmem>>, %arg8: memref<1x16xf32, #tpu.memory_space<vmem>>, %arg9: memref<48x128xbf16, #tpu.memory_space<vmem>>, %arg10: memref<1x128xf32, #tpu.memory_space<vmem>>, %arg11: memref<2x128xf32, #tpu.memory_space<vmem>>, %arg12: memref<32x32xf32, #tpu.memory_space<vmem>>) attributes {dimension_semantics = [#tpu.dimension_semantics<arbitrary>], iteration_bounds = array<i64: 1>, scalar_prefetch = 1 : i64, scratch_operands = 1 : i64, tpu.core_type = #tpu.core_type<tc>, window_params = [{pipeline_mode = #tpu.pipeline_mode<synchronous>, transform_indices = @transform_0, window_bounds = array<i64: 50, 32>}, {pipeline_mode = #tpu.pipeline_mode<synchronous>, transform_indices = @transform_1, window_bounds = array<i64: 96, 16>}, {pipeline_mode = #tpu.pipeline_mode<synchronous>, transform_indices = @transform_2, window_bounds = array<i64: 1, 16>}, {pipeline_mode = #tpu.pipeline_mode<synchronous>, transform_indices = @transform_3, window_bounds = array<i64: 128, 16>}, {pipeline_mode = #tpu.pipeline_mode<synchronous>, transform_indices = @transform_4, window_bounds = array<i64: 1, 16>}, {pipeline_mode = #tpu.pipeline_mode<synchronous>, transform_indices = @transform_5, window_bounds = array<i64: 160, 16>}, {pipeline_mode = #tpu.pipeline_mode<synchronous>, transform_indices = @transform_6, window_bounds = array<i64: 1, 16>}, {pipeline_mode = #tpu.pipeline_mode<synchronous>, transform_indices = @transform_7, window_bounds = array<i64: 48, 128>}, {pipeline_mode = #tpu.pipeline_mode<synchronous>, transform_indices = @transform_8, window_bounds = array<i64: 1, 128>}, {pipeline_mode = #tpu.pipeline_mode<synchronous>, transform_indices = @transform_9, window_bounds = array<i64: 2, 128>}]} {
    %c0 = arith.constant 0 : index
    %0 = memref.load %arg1[%c0] : memref<32xi32, #tpu.memory_space<smem>>
    %1 = arith.index_cast %0 : i32 to index
    %c0_0 = arith.constant 0 : index
    %2 = vector.load %arg2[%1, %c0_0] : memref<50x32xf32, #tpu.memory_space<vmem>>, vector<1x32xf32>
    %c0_1 = arith.constant 0 : index
    %c0_2 = arith.constant 0 : index
    %3 = vector.load %arg12[%c0_1, %c0_2] : memref<32x32xf32, #tpu.memory_space<vmem>>, vector<1x32xf32>
    tpu.vector_store %arg12[%c0_1, %c0_2], %2 {strides = array<i32>} : memref<32x32xf32, #tpu.memory_space<vmem>>, vector<1x32xf32>,
    %c1 = arith.constant 1 : index
    %4 = memref.load %arg1[%c1] : memref<32xi32, #tpu.memory_space<smem>>
    %5 = arith.index_cast %4 : i32 to index
    %c0_3 = arith.constant 0 : index
    %6 = vector.load %arg2[%5, %c0_3] : memref<50x32xf32, #tpu.memory_space<vmem>>, vector<1x32xf32>
    %c1_4 = arith.constant 1 : index
    %c0_5 = arith.constant 0 : index
    %7 = vector.load %arg12[%c1_4, %c0_5] : memref<32x32xf32, #tpu.memory_space<vmem>>, vector<1x32xf32>
    tpu.vector_store %arg12[%c1_4, %c0_5], %6 {strides = array<i32>} : memref<32x32xf32, #tpu.memory_space<vmem>>, vector<1x32xf32>,
    %c2 = arith.constant 2 : index
    %8 = memref.load %arg1[%c2] : memref<32xi32, #tpu.memory_space<smem>>
    %9 = arith.index_cast %8 : i32 to index
    %c0_6 = arith.constant 0 : index
    %10 = vector.load %arg2[%9, %c0_6] : memref<50x32xf32, #tpu.memory_space<vmem>>, vector<1x32xf32>
    %c2_7 = arith.constant 2 : index
    %c0_8 = arith.constant 0 : index
    %11 = vector.load %arg12[%c2_7, %c0_8] : memref<32x32xf32, #tpu.memory_space<vmem>>, vector<1x32xf32>
    tpu.vector_store %arg12[%c2_7, %c0_8], %10 {strides = array<i32>} : memref<32x32xf32, #tpu.memory_space<vmem>>, vector<1x32xf32>,
    %c3 = arith.constant 3 : index
    %12 = memref.load %arg1[%c3] : memref<32xi32, #tpu.memory_space<smem>>
    %13 = arith.index_cast %12 : i32 to index
    %c0_9 = arith.constant 0 : index
    %14 = vector.load %arg2[%13, %c0_9] : memref<50x32xf32, #tpu.memory_space<vmem>>, vector<1x32xf32>
    %c3_10 = arith.constant 3 : index
    %c0_11 = arith.constant 0 : index
    %15 = vector.load %arg12[%c3_10, %c0_11] : memref<32x32xf32, #tpu.memory_space<vmem>>, vector<1x32xf32>
    tpu.vector_store %arg12[%c3_10, %c0_11], %14 {strides = array<i32>} : memref<32x32xf32, #tpu.memory_space<vmem>>, vector<1x32xf32>,
    %c4 = arith.constant 4 : index
    %16 = memref.load %arg1[%c4] : memref<32xi32, #tpu.memory_space<smem>>
    %17 = arith.index_cast %16 : i32 to index
    %c0_12 = arith.constant 0 : index
    %18 = vector.load %arg2[%17, %c0_12] : memref<50x32xf32, #tpu.memory_space<vmem>>, vector<1x32xf32>
    %c4_13 = arith.constant 4 : index
    %c0_14 = arith.constant 0 : index
    %19 = vector.load %arg12[%c4_13, %c0_14] : memref<32x32xf32, #tpu.memory_space<vmem>>, vector<1x32xf32>
    tpu.vector_store %arg12[%c4_13, %c0_14], %18 {strides = array<i32>} : memref<32x32xf32, #tpu.memory_space<vmem>>, vector<1x32xf32>,
    %c5 = arith.constant 5 : index
    %20 = memref.load %arg1[%c5] : memref<32xi32, #tpu.memory_space<smem>>
    %21 = arith.index_cast %20 : i32 to index
    %c0_15 = arith.constant 0 : index
    %22 = vector.load %arg2[%21, %c0_15] : memref<50x32xf32, #tpu.memory_space<vmem>>, vector<1x32xf32>
    %c5_16 = arith.constant 5 : index
    %c0_17 = arith.constant 0 : index
    %23 = vector.load %arg12[%c5_16, %c0_17] : memref<32x32xf32, #tpu.memory_space<vmem>>, vector<1x32xf32>
    tpu.vector_store %arg12[%c5_16, %c0_17], %22 {strides = array<i32>} : memref<32x32xf32, #tpu.memory_space<vmem>>, vector<1x32xf32>,
    %c6 = arith.constant 6 : index
    %24 = memref.load %arg1[%c6] : memref<32xi32, #tpu.memory_space<smem>>
    %25 = arith.index_cast %24 : i32 to index
    %c0_18 = arith.constant 0 : index
    %26 = vector.load %arg2[%25, %c0_18] : memref<50x32xf32, #tpu.memory_space<vmem>>, vector<1x32xf32>
    %c6_19 = arith.constant 6 : index
    %c0_20 = arith.constant 0 : index
    %27 = vector.load %arg12[%c6_19, %c0_20] : memref<32x32xf32, #tpu.memory_space<vmem>>, vector<1x32xf32>
    tpu.vector_store %arg12[%c6_19, %c0_20], %26 {strides = array<i32>} : memref<32x32xf32, #tpu.memory_space<vmem>>, vector<1x32xf32>,
    %c7 = arith.constant 7 : index
    %28 = memref.load %arg1[%c7] : memref<32xi32, #tpu.memory_space<smem>>
    %29 = arith.index_cast %28 : i32 to index
    %c0_21 = arith.constant 0 : index
    %30 = vector.load %arg2[%29, %c0_21] : memref<50x32xf32, #tpu.memory_space<vmem>>, vector<1x32xf32>
    %c7_22 = arith.constant 7 : index
    %c0_23 = arith.constant 0 : index
    %31 = vector.load %arg12[%c7_22, %c0_23] : memref<32x32xf32, #tpu.memory_space<vmem>>, vector<1x32xf32>
    tpu.vector_store %arg12[%c7_22, %c0_23], %30 {strides = array<i32>} : memref<32x32xf32, #tpu.memory_space<vmem>>, vector<1x32xf32>,
    %c8 = arith.constant 8 : index
    %32 = memref.load %arg1[%c8] : memref<32xi32, #tpu.memory_space<smem>>
    %33 = arith.index_cast %32 : i32 to index
    %c0_24 = arith.constant 0 : index
    %34 = vector.load %arg2[%33, %c0_24] : memref<50x32xf32, #tpu.memory_space<vmem>>, vector<1x32xf32>
    %c8_25 = arith.constant 8 : index
    %c0_26 = arith.constant 0 : index
    %35 = vector.load %arg12[%c8_25, %c0_26] : memref<32x32xf32, #tpu.memory_space<vmem>>, vector<1x32xf32>
    tpu.vector_store %arg12[%c8_25, %c0_26], %34 {strides = array<i32>} : memref<32x32xf32, #tpu.memory_space<vmem>>, vector<1x32xf32>,
    %c9 = arith.constant 9 : index
    %36 = memref.load %arg1[%c9] : memref<32xi32, #tpu.memory_space<smem>>
    %37 = arith.index_cast %36 : i32 to index
    %c0_27 = arith.constant 0 : index
    %38 = vector.load %arg2[%37, %c0_27] : memref<50x32xf32, #tpu.memory_space<vmem>>, vector<1x32xf32>
    %c9_28 = arith.constant 9 : index
    %c0_29 = arith.constant 0 : index
    %39 = vector.load %arg12[%c9_28, %c0_29] : memref<32x32xf32, #tpu.memory_space<vmem>>, vector<1x32xf32>
    tpu.vector_store %arg12[%c9_28, %c0_29], %38 {strides = array<i32>} : memref<32x32xf32, #tpu.memory_space<vmem>>, vector<1x32xf32>,
    %c10 = arith.constant 10 : index
    %40 = memref.load %arg1[%c10] : memref<32xi32, #tpu.memory_space<smem>>
    %41 = arith.index_cast %40 : i32 to index
    %c0_30 = arith.constant 0 : index
    %42 = vector.load %arg2[%41, %c0_30] : memref<50x32xf32, #tpu.memory_space<vmem>>, vector<1x32xf32>
    %c10_31 = arith.constant 10 : index
    %c0_32 = arith.constant 0 : index
    %43 = vector.load %arg12[%c10_31, %c0_32] : memref<32x32xf32, #tpu.memory_space<vmem>>, vector<1x32xf32>
    tpu.vector_store %arg12[%c10_31, %c0_32], %42 {strides = array<i32>} : memref<32x32xf32, #tpu.memory_space<vmem>>, vector<1x32xf32>,
    %c11 = arith.constant 11 : index
    %44 = memref.load %arg1[%c11] : memref<32xi32, #tpu.memory_space<smem>>
    %45 = arith.index_cast %44 : i32 to index
    %c0_33 = arith.constant 0 : index
    %46 = vector.load %arg2[%45, %c0_33] : memref<50x32xf32, #tpu.memory_space<vmem>>, vector<1x32xf32>
    %c11_34 = arith.constant 11 : index
    %c0_35 = arith.constant 0 : index
    %47 = vector.load %arg12[%c11_34, %c0_35] : memref<32x32xf32, #tpu.memory_space<vmem>>, vector<1x32xf32>
    tpu.vector_store %arg12[%c11_34, %c0_35], %46 {strides = array<i32>} : memref<32x32xf32, #tpu.memory_space<vmem>>, vector<1x32xf32>,
    %c12 = arith.constant 12 : index
    %48 = memref.load %arg1[%c12] : memref<32xi32, #tpu.memory_space<smem>>
    %49 = arith.index_cast %48 : i32 to index
    %c0_36 = arith.constant 0 : index
    %50 = vector.load %arg2[%49, %c0_36] : memref<50x32xf32, #tpu.memory_space<vmem>>, vector<1x32xf32>
    %c12_37 = arith.constant 12 : index
    %c0_38 = arith.constant 0 : index
    %51 = vector.load %arg12[%c12_37, %c0_38] : memref<32x32xf32, #tpu.memory_space<vmem>>, vector<1x32xf32>
    tpu.vector_store %arg12[%c12_37, %c0_38], %50 {strides = array<i32>} : memref<32x32xf32, #tpu.memory_space<vmem>>, vector<1x32xf32>,
    %c13 = arith.constant 13 : index
    %52 = memref.load %arg1[%c13] : memref<32xi32, #tpu.memory_space<smem>>
    %53 = arith.index_cast %52 : i32 to index
    %c0_39 = arith.constant 0 : index
    %54 = vector.load %arg2[%53, %c0_39] : memref<50x32xf32, #tpu.memory_space<vmem>>, vector<1x32xf32>
    %c13_40 = arith.constant 13 : index
    %c0_41 = arith.constant 0 : index
    %55 = vector.load %arg12[%c13_40, %c0_41] : memref<32x32xf32, #tpu.memory_space<vmem>>, vector<1x32xf32>
    tpu.vector_store %arg12[%c13_40, %c0_41], %54 {strides = array<i32>} : memref<32x32xf32, #tpu.memory_space<vmem>>, vector<1x32xf32>,
    %c14 = arith.constant 14 : index
    %56 = memref.load %arg1[%c14] : memref<32xi32, #tpu.memory_space<smem>>
    %57 = arith.index_cast %56 : i32 to index
    %c0_42 = arith.constant 0 : index
    %58 = vector.load %arg2[%57, %c0_42] : memref<50x32xf32, #tpu.memory_space<vmem>>, vector<1x32xf32>
    %c14_43 = arith.constant 14 : index
    %c0_44 = arith.constant 0 : index
    %59 = vector.load %arg12[%c14_43, %c0_44] : memref<32x32xf32, #tpu.memory_space<vmem>>, vector<1x32xf32>
    tpu.vector_store %arg12[%c14_43, %c0_44], %58 {strides = array<i32>} : memref<32x32xf32, #tpu.memory_space<vmem>>, vector<1x32xf32>,
    %c15 = arith.constant 15 : index
    %60 = memref.load %arg1[%c15] : memref<32xi32, #tpu.memory_space<smem>>
    %61 = arith.index_cast %60 : i32 to index
    %c0_45 = arith.constant 0 : index
    %62 = vector.load %arg2[%61, %c0_45] : memref<50x32xf32, #tpu.memory_space<vmem>>, vector<1x32xf32>
    %c15_46 = arith.constant 15 : index
    %c0_47 = arith.constant 0 : index
    %63 = vector.load %arg12[%c15_46, %c0_47] : memref<32x32xf32, #tpu.memory_space<vmem>>, vector<1x32xf32>
    tpu.vector_store %arg12[%c15_46, %c0_47], %62 {strides = array<i32>} : memref<32x32xf32, #tpu.memory_space<vmem>>, vector<1x32xf32>,
    %c16 = arith.constant 16 : index
    %64 = memref.load %arg1[%c16] : memref<32xi32, #tpu.memory_space<smem>>
    %65 = arith.index_cast %64 : i32 to index
    %c0_48 = arith.constant 0 : index
    %66 = vector.load %arg2[%65, %c0_48] : memref<50x32xf32, #tpu.memory_space<vmem>>, vector<1x32xf32>
    %c16_49 = arith.constant 16 : index
    %c0_50 = arith.constant 0 : index
    %67 = vector.load %arg12[%c16_49, %c0_50] : memref<32x32xf32, #tpu.memory_space<vmem>>, vector<1x32xf32>
    tpu.vector_store %arg12[%c16_49, %c0_50], %66 {strides = array<i32>} : memref<32x32xf32, #tpu.memory_space<vmem>>, vector<1x32xf32>,
    %c17 = arith.constant 17 : index
    %68 = memref.load %arg1[%c17] : memref<32xi32, #tpu.memory_space<smem>>
    %69 = arith.index_cast %68 : i32 to index
    %c0_51 = arith.constant 0 : index
    %70 = vector.load %arg2[%69, %c0_51] : memref<50x32xf32, #tpu.memory_space<vmem>>, vector<1x32xf32>
    %c17_52 = arith.constant 17 : index
    %c0_53 = arith.constant 0 : index
    %71 = vector.load %arg12[%c17_52, %c0_53] : memref<32x32xf32, #tpu.memory_space<vmem>>, vector<1x32xf32>
    tpu.vector_store %arg12[%c17_52, %c0_53], %70 {strides = array<i32>} : memref<32x32xf32, #tpu.memory_space<vmem>>, vector<1x32xf32>,
    %c18 = arith.constant 18 : index
    %72 = memref.load %arg1[%c18] : memref<32xi32, #tpu.memory_space<smem>>
    %73 = arith.index_cast %72 : i32 to index
    %c0_54 = arith.constant 0 : index
    %74 = vector.load %arg2[%73, %c0_54] : memref<50x32xf32, #tpu.memory_space<vmem>>, vector<1x32xf32>
    %c18_55 = arith.constant 18 : index
    %c0_56 = arith.constant 0 : index
    %75 = vector.load %arg12[%c18_55, %c0_56] : memref<32x32xf32, #tpu.memory_space<vmem>>, vector<1x32xf32>
    tpu.vector_store %arg12[%c18_55, %c0_56], %74 {strides = array<i32>} : memref<32x32xf32, #tpu.memory_space<vmem>>, vector<1x32xf32>,
    %c19 = arith.constant 19 : index
    %76 = memref.load %arg1[%c19] : memref<32xi32, #tpu.memory_space<smem>>
    %77 = arith.index_cast %76 : i32 to index
    %c0_57 = arith.constant 0 : index
    %78 = vector.load %arg2[%77, %c0_57] : memref<50x32xf32, #tpu.memory_space<vmem>>, vector<1x32xf32>
    %c19_58 = arith.constant 19 : index
    %c0_59 = arith.constant 0 : index
    %79 = vector.load %arg12[%c19_58, %c0_59] : memref<32x32xf32, #tpu.memory_space<vmem>>, vector<1x32xf32>
    tpu.vector_store %arg12[%c19_58, %c0_59], %78 {strides = array<i32>} : memref<32x32xf32, #tpu.memory_space<vmem>>, vector<1x32xf32>,
    %c20 = arith.constant 20 : index
    %80 = memref.load %arg1[%c20] : memref<32xi32, #tpu.memory_space<smem>>
    %81 = arith.index_cast %80 : i32 to index
    %c0_60 = arith.constant 0 : index
    %82 = vector.load %arg2[%81, %c0_60] : memref<50x32xf32, #tpu.memory_space<vmem>>, vector<1x32xf32>
    %c20_61 = arith.constant 20 : index
    %c0_62 = arith.constant 0 : index
    %83 = vector.load %arg12[%c20_61, %c0_62] : memref<32x32xf32, #tpu.memory_space<vmem>>, vector<1x32xf32>
    tpu.vector_store %arg12[%c20_61, %c0_62], %82 {strides = array<i32>} : memref<32x32xf32, #tpu.memory_space<vmem>>, vector<1x32xf32>,
    %c21 = arith.constant 21 : index
    %84 = memref.load %arg1[%c21] : memref<32xi32, #tpu.memory_space<smem>>
    %85 = arith.index_cast %84 : i32 to index
    %c0_63 = arith.constant 0 : index
    %86 = vector.load %arg2[%85, %c0_63] : memref<50x32xf32, #tpu.memory_space<vmem>>, vector<1x32xf32>
    %c21_64 = arith.constant 21 : index
    %c0_65 = arith.constant 0 : index
    %87 = vector.load %arg12[%c21_64, %c0_65] : memref<32x32xf32, #tpu.memory_space<vmem>>, vector<1x32xf32>
    tpu.vector_store %arg12[%c21_64, %c0_65], %86 {strides = array<i32>} : memref<32x32xf32, #tpu.memory_space<vmem>>, vector<1x32xf32>,
    %c22 = arith.constant 22 : index
    %88 = memref.load %arg1[%c22] : memref<32xi32, #tpu.memory_space<smem>>
    %89 = arith.index_cast %88 : i32 to index
    %c0_66 = arith.constant 0 : index
    %90 = vector.load %arg2[%89, %c0_66] : memref<50x32xf32, #tpu.memory_space<vmem>>, vector<1x32xf32>
    %c22_67 = arith.constant 22 : index
    %c0_68 = arith.constant 0 : index
    %91 = vector.load %arg12[%c22_67, %c0_68] : memref<32x32xf32, #tpu.memory_space<vmem>>, vector<1x32xf32>
    tpu.vector_store %arg12[%c22_67, %c0_68], %90 {strides = array<i32>} : memref<32x32xf32, #tpu.memory_space<vmem>>, vector<1x32xf32>,
    %c23 = arith.constant 23 : index
    %92 = memref.load %arg1[%c23] : memref<32xi32, #tpu.memory_space<smem>>
    %93 = arith.index_cast %92 : i32 to index
    %c0_69 = arith.constant 0 : index
    %94 = vector.load %arg2[%93, %c0_69] : memref<50x32xf32, #tpu.memory_space<vmem>>, vector<1x32xf32>
    %c23_70 = arith.constant 23 : index
    %c0_71 = arith.constant 0 : index
    %95 = vector.load %arg12[%c23_70, %c0_71] : memref<32x32xf32, #tpu.memory_space<vmem>>, vector<1x32xf32>
    tpu.vector_store %arg12[%c23_70, %c0_71], %94 {strides = array<i32>} : memref<32x32xf32, #tpu.memory_space<vmem>>, vector<1x32xf32>,
    %c24 = arith.constant 24 : index
    %96 = memref.load %arg1[%c24] : memref<32xi32, #tpu.memory_space<smem>>
    %97 = arith.index_cast %96 : i32 to index
    %c0_72 = arith.constant 0 : index
    %98 = vector.load %arg2[%97, %c0_72] : memref<50x32xf32, #tpu.memory_space<vmem>>, vector<1x32xf32>
    %c24_73 = arith.constant 24 : index
    %c0_74 = arith.constant 0 : index
    %99 = vector.load %arg12[%c24_73, %c0_74] : memref<32x32xf32, #tpu.memory_space<vmem>>, vector<1x32xf32>
    tpu.vector_store %arg12[%c24_73, %c0_74], %98 {strides = array<i32>} : memref<32x32xf32, #tpu.memory_space<vmem>>, vector<1x32xf32>,
    %c25 = arith.constant 25 : index
    %100 = memref.load %arg1[%c25] : memref<32xi32, #tpu.memory_space<smem>>
    %101 = arith.index_cast %100 : i32 to index
    %c0_75 = arith.constant 0 : index
    %102 = vector.load %arg2[%101, %c0_75] : memref<50x32xf32, #tpu.memory_space<vmem>>, vector<1x32xf32>
    %c25_76 = arith.constant 25 : index
    %c0_77 = arith.constant 0 : index
    %103 = vector.load %arg12[%c25_76, %c0_77] : memref<32x32xf32, #tpu.memory_space<vmem>>, vector<1x32xf32>
    tpu.vector_store %arg12[%c25_76, %c0_77], %102 {strides = array<i32>} : memref<32x32xf32, #tpu.memory_space<vmem>>, vector<1x32xf32>,
    %c26 = arith.constant 26 : index
    %104 = memref.load %arg1[%c26] : memref<32xi32, #tpu.memory_space<smem>>
    %105 = arith.index_cast %104 : i32 to index
    %c0_78 = arith.constant 0 : index
    %106 = vector.load %arg2[%105, %c0_78] : memref<50x32xf32, #tpu.memory_space<vmem>>, vector<1x32xf32>
    %c26_79 = arith.constant 26 : index
    %c0_80 = arith.constant 0 : index
    %107 = vector.load %arg12[%c26_79, %c0_80] : memref<32x32xf32, #tpu.memory_space<vmem>>, vector<1x32xf32>
    tpu.vector_store %arg12[%c26_79, %c0_80], %106 {strides = array<i32>} : memref<32x32xf32, #tpu.memory_space<vmem>>, vector<1x32xf32>,
    %c27 = arith.constant 27 : index
    %108 = memref.load %arg1[%c27] : memref<32xi32, #tpu.memory_space<smem>>
    %109 = arith.index_cast %108 : i32 to index
    %c0_81 = arith.constant 0 : index
    %110 = vector.load %arg2[%109, %c0_81] : memref<50x32xf32, #tpu.memory_space<vmem>>, vector<1x32xf32>
    %c27_82 = arith.constant 27 : index
    %c0_83 = arith.constant 0 : index
    %111 = vector.load %arg12[%c27_82, %c0_83] : memref<32x32xf32, #tpu.memory_space<vmem>>, vector<1x32xf32>
    tpu.vector_store %arg12[%c27_82, %c0_83], %110 {strides = array<i32>} : memref<32x32xf32, #tpu.memory_space<vmem>>, vector<1x32xf32>,
    %c28 = arith.constant 28 : index
    %112 = memref.load %arg1[%c28] : memref<32xi32, #tpu.memory_space<smem>>
    %113 = arith.index_cast %112 : i32 to index
    %c0_84 = arith.constant 0 : index
    %114 = vector.load %arg2[%113, %c0_84] : memref<50x32xf32, #tpu.memory_space<vmem>>, vector<1x32xf32>
    %c28_85 = arith.constant 28 : index
    %c0_86 = arith.constant 0 : index
    %115 = vector.load %arg12[%c28_85, %c0_86] : memref<32x32xf32, #tpu.memory_space<vmem>>, vector<1x32xf32>
    tpu.vector_store %arg12[%c28_85, %c0_86], %114 {strides = array<i32>} : memref<32x32xf32, #tpu.memory_space<vmem>>, vector<1x32xf32>,
    %c29 = arith.constant 29 : index
    %116 = memref.load %arg1[%c29] : memref<32xi32, #tpu.memory_space<smem>>
    %117 = arith.index_cast %116 : i32 to index
    %c0_87 = arith.constant 0 : index
    %118 = vector.load %arg2[%117, %c0_87] : memref<50x32xf32, #tpu.memory_space<vmem>>, vector<1x32xf32>
    %c29_88 = arith.constant 29 : index
    %c0_89 = arith.constant 0 : index
    %119 = vector.load %arg12[%c29_88, %c0_89] : memref<32x32xf32, #tpu.memory_space<vmem>>, vector<1x32xf32>
    tpu.vector_store %arg12[%c29_88, %c0_89], %118 {strides = array<i32>} : memref<32x32xf32, #tpu.memory_space<vmem>>, vector<1x32xf32>,
    %c30 = arith.constant 30 : index
    %120 = memref.load %arg1[%c30] : memref<32xi32, #tpu.memory_space<smem>>
    %121 = arith.index_cast %120 : i32 to index
    %c0_90 = arith.constant 0 : index
    %122 = vector.load %arg2[%121, %c0_90] : memref<50x32xf32, #tpu.memory_space<vmem>>, vector<1x32xf32>
    %c30_91 = arith.constant 30 : index
    %c0_92 = arith.constant 0 : index
    %123 = vector.load %arg12[%c30_91, %c0_92] : memref<32x32xf32, #tpu.memory_space<vmem>>, vector<1x32xf32>
    tpu.vector_store %arg12[%c30_91, %c0_92], %122 {strides = array<i32>} : memref<32x32xf32, #tpu.memory_space<vmem>>, vector<1x32xf32>,
    %c31 = arith.constant 31 : index
    %124 = memref.load %arg1[%c31] : memref<32xi32, #tpu.memory_space<smem>>
    %125 = arith.index_cast %124 : i32 to index
    %c0_93 = arith.constant 0 : index
    %126 = vector.load %arg2[%125, %c0_93] : memref<50x32xf32, #tpu.memory_space<vmem>>, vector<1x32xf32>
    %c31_94 = arith.constant 31 : index
    %c0_95 = arith.constant 0 : index
    %127 = vector.load %arg12[%c31_94, %c0_95] : memref<32x32xf32, #tpu.memory_space<vmem>>, vector<1x32xf32>
    tpu.vector_store %arg12[%c31_94, %c0_95], %126 {strides = array<i32>} : memref<32x32xf32, #tpu.memory_space<vmem>>, vector<1x32xf32>,
    %c0_96 = arith.constant 0 : index
    %c0_97 = arith.constant 0 : index
    %128 = vector.load %arg12[%c0_96, %c0_97] : memref<32x32xf32, #tpu.memory_space<vmem>>, vector<32x32xf32>
    %129 = vector.extract_strided_slice %128 {offsets = [0, 0], sizes = [30, 32], strides = [1, 1]} : vector<32x32xf32> to vector<30x32xf32>
    %130 = vector.extract_strided_slice %128 {offsets = [1, 0], sizes = [30, 32], strides = [1, 1]} : vector<32x32xf32> to vector<30x32xf32>
    %131 = vector.extract_strided_slice %128 {offsets = [2, 0], sizes = [30, 32], strides = [1, 1]} : vector<32x32xf32> to vector<30x32xf32>
    %132 = tpu.concatenate %129, %130, %131 in 1 : vector<30x32xf32>, vector<30x32xf32>, vector<30x32xf32> -> vector<30x96xf32>
    %133 = arith.truncf %132 : vector<30x96xf32> to vector<30x96xbf16>
    %c0_98 = arith.constant 0 : index
    %c0_99 = arith.constant 0 : index
    %134 = vector.load %arg3[%c0_98, %c0_99] : memref<96x16xbf16, #tpu.memory_space<vmem>>, vector<96x16xbf16>
    %cst = arith.constant dense<0.000000e+00> : vector<30x16xf32>
    %135 = tpu.matmul %133, %134, %cst {dimension_numbers = #tpu.dot_dimension_numbers<[1], [0], [0], [1], [0, 0, 1, 1], [], []>} : vector<30x96xbf16>, vector<96x16xbf16>, vector<30x16xf32> -> vector<30x16xf32>
    %136 = vector.extract_strided_slice %135 {offsets = [0, 0], sizes = [14, 16], strides = [1, 1]} : vector<30x16xf32> to vector<14x16xf32>
    %cst_100 = arith.constant dense<0xFF800000> : vector<16xf32>
    %137 = vector.multi_reduction <maximumf>, %136, %cst_100 [0] : vector<14x16xf32> to vector<16xf32>
    %138 = vector.shape_cast %137 : vector<16xf32> to vector<1x16xf32>
    %139 = vector.extract_strided_slice %135 {offsets = [16, 0], sizes = [14, 16], strides = [1, 1]} : vector<30x16xf32> to vector<14x16xf32>
    %cst_101 = arith.constant dense<0xFF800000> : vector<16xf32>
    %140 = vector.multi_reduction <maximumf>, %139, %cst_101 [0] : vector<14x16xf32> to vector<16xf32>
    %141 = vector.shape_cast %140 : vector<16xf32> to vector<1x16xf32>
    %142 = tpu.concatenate %138, %141 in 0 : vector<1x16xf32>, vector<1x16xf32> -> vector<2x16xf32>
    %c0_102 = arith.constant 0 : index
    %c0_103 = arith.constant 0 : index
    %143 = vector.load %arg4[%c0_102, %c0_103] : memref<1x16xf32, #tpu.memory_space<vmem>>, vector<1x16xf32>
    %144 = vector.broadcast %143 : vector<1x16xf32> to vector<2x16xf32>
    %145 = arith.addf %142, %144 : vector<2x16xf32>
    %cst_104 = arith.constant 0.000000e+00 : f32
    %146 = vector.broadcast %cst_104 : f32 to vector<2x16xf32>
    %147 = arith.maximumf %145, %146 : vector<2x16xf32>
    %148 = vector.extract_strided_slice %128 {offsets = [0, 0], sizes = [29, 32], strides = [1, 1]} : vector<32x32xf32> to vector<29x32xf32>
    %149 = vector.extract_strided_slice %128 {offsets = [1, 0], sizes = [29, 32], strides = [1, 1]} : vector<32x32xf32> to vector<29x32xf32>
    %150 = vector.extract_strided_slice %128 {offsets = [2, 0], sizes = [29, 32], strides = [1, 1]} : vector<32x32xf32> to vector<29x32xf32>
    %151 = vector.extract_strided_slice %128 {offsets = [3, 0], sizes = [29, 32], strides = [1, 1]} : vector<32x32xf32> to vector<29x32xf32>
    %152 = tpu.concatenate %148, %149, %150, %151 in 1 : vector<29x32xf32>, vector<29x32xf32>, vector<29x32xf32>, vector<29x32xf32> -> vector<29x128xf32>
    %153 = arith.truncf %152 : vector<29x128xf32> to vector<29x128xbf16>
    %c0_105 = arith.constant 0 : index
    %c0_106 = arith.constant 0 : index
    %154 = vector.load %arg5[%c0_105, %c0_106] : memref<128x16xbf16, #tpu.memory_space<vmem>>, vector<128x16xbf16>
    %cst_107 = arith.constant dense<0.000000e+00> : vector<29x16xf32>
    %155 = tpu.matmul %153, %154, %cst_107 {dimension_numbers = #tpu.dot_dimension_numbers<[1], [0], [0], [1], [0, 0, 1, 1], [], []>} : vector<29x128xbf16>, vector<128x16xbf16>, vector<29x16xf32> -> vector<29x16xf32>
    %156 = vector.extract_strided_slice %155 {offsets = [0, 0], sizes = [13, 16], strides = [1, 1]} : vector<29x16xf32> to vector<13x16xf32>
    %cst_108 = arith.constant dense<0xFF800000> : vector<16xf32>
    %157 = vector.multi_reduction <maximumf>, %156, %cst_108 [0] : vector<13x16xf32> to vector<16xf32>
    %158 = vector.shape_cast %157 : vector<16xf32> to vector<1x16xf32>
    %159 = vector.extract_strided_slice %155 {offsets = [16, 0], sizes = [13, 16], strides = [1, 1]} : vector<29x16xf32> to vector<13x16xf32>
    %cst_109 = arith.constant dense<0xFF800000> : vector<16xf32>
    %160 = vector.multi_reduction <maximumf>, %159, %cst_109 [0] : vector<13x16xf32> to vector<16xf32>
    %161 = vector.shape_cast %160 : vector<16xf32> to vector<1x16xf32>
    %162 = tpu.concatenate %158, %161 in 0 : vector<1x16xf32>, vector<1x16xf32> -> vector<2x16xf32>
    %c0_110 = arith.constant 0 : index
    %c0_111 = arith.constant 0 : index
    %163 = vector.load %arg6[%c0_110, %c0_111] : memref<1x16xf32, #tpu.memory_space<vmem>>, vector<1x16xf32>
    %164 = vector.broadcast %163 : vector<1x16xf32> to vector<2x16xf32>
    %165 = arith.addf %162, %164 : vector<2x16xf32>
    %cst_112 = arith.constant 0.000000e+00 : f32
    %166 = vector.broadcast %cst_112 : f32 to vector<2x16xf32>
    %167 = arith.maximumf %165, %166 : vector<2x16xf32>
    %168 = vector.extract_strided_slice %128 {offsets = [0, 0], sizes = [28, 32], strides = [1, 1]} : vector<32x32xf32> to vector<28x32xf32>
    %169 = vector.extract_strided_slice %128 {offsets = [1, 0], sizes = [28, 32], strides = [1, 1]} : vector<32x32xf32> to vector<28x32xf32>
    %170 = vector.extract_strided_slice %128 {offsets = [2, 0], sizes = [28, 32], strides = [1, 1]} : vector<32x32xf32> to vector<28x32xf32>
    %171 = vector.extract_strided_slice %128 {offsets = [3, 0], sizes = [28, 32], strides = [1, 1]} : vector<32x32xf32> to vector<28x32xf32>
    %172 = vector.extract_strided_slice %128 {offsets = [4, 0], sizes = [28, 32], strides = [1, 1]} : vector<32x32xf32> to vector<28x32xf32>
    %173 = tpu.concatenate %168, %169, %170, %171, %172 in 1 : vector<28x32xf32>, vector<28x32xf32>, vector<28x32xf32>, vector<28x32xf32>, vector<28x32xf32> -> vector<28x160xf32>
    %174 = arith.truncf %173 : vector<28x160xf32> to vector<28x160xbf16>
    %c0_113 = arith.constant 0 : index
    %c0_114 = arith.constant 0 : index
    %175 = vector.load %arg7[%c0_113, %c0_114] : memref<160x16xbf16, #tpu.memory_space<vmem>>, vector<160x16xbf16>
    %cst_115 = arith.constant dense<0.000000e+00> : vector<28x16xf32>
    %176 = tpu.matmul %174, %175, %cst_115 {dimension_numbers = #tpu.dot_dimension_numbers<[1], [0], [0], [1], [0, 0, 1, 1], [], []>} : vector<28x160xbf16>, vector<160x16xbf16>, vector<28x16xf32> -> vector<28x16xf32>
    %177 = vector.extract_strided_slice %176 {offsets = [0, 0], sizes = [12, 16], strides = [1, 1]} : vector<28x16xf32> to vector<12x16xf32>
    %cst_116 = arith.constant dense<0xFF800000> : vector<16xf32>
    %178 = vector.multi_reduction <maximumf>, %177, %cst_116 [0] : vector<12x16xf32> to vector<16xf32>
    %179 = vector.shape_cast %178 : vector<16xf32> to vector<1x16xf32>
    %180 = vector.extract_strided_slice %176 {offsets = [16, 0], sizes = [12, 16], strides = [1, 1]} : vector<28x16xf32> to vector<12x16xf32>
    %cst_117 = arith.constant dense<0xFF800000> : vector<16xf32>
    %181 = vector.multi_reduction <maximumf>, %180, %cst_117 [0] : vector<12x16xf32> to vector<16xf32>
    %182 = vector.shape_cast %181 : vector<16xf32> to vector<1x16xf32>
    %183 = tpu.concatenate %179, %182 in 0 : vector<1x16xf32>, vector<1x16xf32> -> vector<2x16xf32>
    %c0_118 = arith.constant 0 : index
    %c0_119 = arith.constant 0 : index
    %184 = vector.load %arg8[%c0_118, %c0_119] : memref<1x16xf32, #tpu.memory_space<vmem>>, vector<1x16xf32>
    %185 = vector.broadcast %184 : vector<1x16xf32> to vector<2x16xf32>
    %186 = arith.addf %183, %185 : vector<2x16xf32>
    %cst_120 = arith.constant 0.000000e+00 : f32
    %187 = vector.broadcast %cst_120 : f32 to vector<2x16xf32>
    %188 = arith.maximumf %186, %187 : vector<2x16xf32>
    %c0_121 = arith.constant 0 : index
    %c0_122 = arith.constant 0 : index
    %189 = vector.load %arg9[%c0_121, %c0_122] : memref<48x128xbf16, #tpu.memory_space<vmem>>, vector<48x128xbf16>
    %190 = arith.truncf %147 : vector<2x16xf32> to vector<2x16xbf16>
    %191 = vector.extract_strided_slice %189 {offsets = [0, 0], sizes = [16, 128], strides = [1, 1]} : vector<48x128xbf16> to vector<16x128xbf16>
    %cst_123 = arith.constant dense<0.000000e+00> : vector<2x128xf32>
    %192 = tpu.matmul %190, %191, %cst_123 {dimension_numbers = #tpu.dot_dimension_numbers<[1], [0], [0], [1], [0, 0, 1, 1], [], []>} : vector<2x16xbf16>, vector<16x128xbf16>, vector<2x128xf32> -> vector<2x128xf32>
    %193 = arith.truncf %167 : vector<2x16xf32> to vector<2x16xbf16>
    %194 = vector.extract_strided_slice %189 {offsets = [16, 0], sizes = [16, 128], strides = [1, 1]} : vector<48x128xbf16> to vector<16x128xbf16>
    %cst_124 = arith.constant dense<0.000000e+00> : vector<2x128xf32>
    %195 = tpu.matmul %193, %194, %cst_124 {dimension_numbers = #tpu.dot_dimension_numbers<[1], [0], [0], [1], [0, 0, 1, 1], [], []>} : vector<2x16xbf16>, vector<16x128xbf16>, vector<2x128xf32> -> vector<2x128xf32>
    %196 = arith.addf %192, %195 : vector<2x128xf32>
    %197 = arith.truncf %188 : vector<2x16xf32> to vector<2x16xbf16>
    %198 = vector.extract_strided_slice %189 {offsets = [32, 0], sizes = [16, 128], strides = [1, 1]} : vector<48x128xbf16> to vector<16x128xbf16>
    %cst_125 = arith.constant dense<0.000000e+00> : vector<2x128xf32>
    %199 = tpu.matmul %197, %198, %cst_125 {dimension_numbers = #tpu.dot_dimension_numbers<[1], [0], [0], [1], [0, 0, 1, 1], [], []>} : vector<2x16xbf16>, vector<16x128xbf16>, vector<2x128xf32> -> vector<2x128xf32>
    %200 = arith.addf %196, %199 : vector<2x128xf32>
    %c0_126 = arith.constant 0 : index
    %c0_127 = arith.constant 0 : index
    %201 = vector.load %arg10[%c0_126, %c0_127] : memref<1x128xf32, #tpu.memory_space<vmem>>, vector<1x128xf32>
    %202 = vector.broadcast %201 : vector<1x128xf32> to vector<2x128xf32>
    %203 = arith.addf %200, %202 : vector<2x128xf32>
    %cst_128 = arith.constant dense<0xFF800000> : vector<2xf32>
    %204 = vector.multi_reduction <maximumf>, %203, %cst_128 [1] : vector<2x128xf32> to vector<2xf32>
    %205 = vector.shape_cast %204 : vector<2xf32> to vector<2x1xf32>
    %206 = vector.broadcast %205 : vector<2x1xf32> to vector<2x128xf32>
    %207 = arith.subf %203, %206 : vector<2x128xf32>
    %208 = math.exp %207 : vector<2x128xf32>
    %cst_129 = arith.constant dense<0.000000e+00> : vector<2xf32>
    %209 = vector.multi_reduction <add>, %208, %cst_129 [1] : vector<2x128xf32> to vector<2xf32>
    %210 = vector.shape_cast %209 : vector<2xf32> to vector<2x1xf32>
    %211 = math.log %210 : vector<2x1xf32>
    %212 = arith.addf %211, %205 : vector<2x1xf32>
    %213 = vector.broadcast %212 : vector<2x1xf32> to vector<2x128xf32>
    %214 = arith.subf %203, %213 : vector<2x128xf32>
    %c0_130 = arith.constant 0 : index
    %c0_131 = arith.constant 0 : index
    %215 = vector.load %arg11[%c0_130, %c0_131] : memref<2x128xf32, #tpu.memory_space<vmem>>, vector<2x128xf32>
    tpu.vector_store %arg11[%c0_130, %c0_131], %214 {strides = array<i32>} : memref<2x128xf32, #tpu.memory_space<vmem>>, vector<2x128xf32>,
    return
  }
  func.func @transform_0(%arg0: i32, %arg1: memref<32xi32, #tpu.memory_space<smem>>) -> (i32, i32) {
    %c0_i32 = arith.constant 0 : i32
    %c0_i32_0 = arith.constant 0 : i32
    %c0_i32_1 = arith.constant 0 : i32
    return %c0_i32, %c0_i32_0 : i32, i32
  }
  func.func @transform_1(%arg0: i32, %arg1: memref<32xi32, #tpu.memory_space<smem>>) -> (i32, i32) {
    %c0_i32 = arith.constant 0 : i32
    %c0_i32_0 = arith.constant 0 : i32
    %c0_i32_1 = arith.constant 0 : i32
    return %c0_i32, %c0_i32_0 : i32, i32
  }
  func.func @transform_2(%arg0: i32, %arg1: memref<32xi32, #tpu.memory_space<smem>>) -> (i32, i32) {
    %c0_i32 = arith.constant 0 : i32
    %c0_i32_0 = arith.constant 0 : i32
    %c0_i32_1 = arith.constant 0 : i32
    return %c0_i32, %c0_i32_0 : i32, i32
  }
  func.func @transform_3(%arg0: i32, %arg1: memref<32xi32, #tpu.memory_space<smem>>) -> (i32, i32) {
    %c0_i32 = arith.constant 0 : i32
    %c0_i32_0 = arith.constant 0 : i32
    %c0_i32_1 = arith.constant 0 : i32
    return %c0_i32, %c0_i32_0 : i32, i32
  }
  func.func @transform_4(%arg0: i32, %arg1: memref<32xi32, #tpu.memory_space<smem>>) -> (i32, i32) {
    %c0_i32 = arith.constant 0 : i32
    %c0_i32_0 = arith.constant 0 : i32
    %c0_i32_1 = arith.constant 0 : i32
    return %c0_i32, %c0_i32_0 : i32, i32
  }
  func.func @transform_5(%arg0: i32, %arg1: memref<32xi32, #tpu.memory_space<smem>>) -> (i32, i32) {
    %c0_i32 = arith.constant 0 : i32
    %c0_i32_0 = arith.constant 0 : i32
    %c0_i32_1 = arith.constant 0 : i32
    return %c0_i32, %c0_i32_0 : i32, i32
  }
  func.func @transform_6(%arg0: i32, %arg1: memref<32xi32, #tpu.memory_space<smem>>) -> (i32, i32) {
    %c0_i32 = arith.constant 0 : i32
    %c0_i32_0 = arith.constant 0 : i32
    %c0_i32_1 = arith.constant 0 : i32
    return %c0_i32, %c0_i32_0 : i32, i32
  }
  func.func @transform_7(%arg0: i32, %arg1: memref<32xi32, #tpu.memory_space<smem>>) -> (i32, i32) {
    %c0_i32 = arith.constant 0 : i32
    %c0_i32_0 = arith.constant 0 : i32
    %c0_i32_1 = arith.constant 0 : i32
    return %c0_i32, %c0_i32_0 : i32, i32
  }
  func.func @transform_8(%arg0: i32, %arg1: memref<32xi32, #tpu.memory_space<smem>>) -> (i32, i32) {
    %c0_i32 = arith.constant 0 : i32
    %c0_i32_0 = arith.constant 0 : i32
    %c0_i32_1 = arith.constant 0 : i32
    return %c0_i32, %c0_i32_0 : i32, i32
  }
  func.func @transform_9(%arg0: i32, %arg1: memref<32xi32, #tpu.memory_space<smem>>) -> (i32, i32) {
    %c0_i32 = arith.constant 0 : i32
    %c0_i32_0 = arith.constant 0 : i32
    %c0_i32_1 = arith.constant 0 : i32
    return %c0_i32, %c0_i32_0 : i32, i32
  }
}

</mosaic_0001>

<bundles_post_ra>
// kernel: tpu_custom_call.1
= control target key start
LH: loop header
LB: loop body
LE: loop exit
PB: predicated region body
PF: predicated region fallthrough
CT: control target
= control target key end

     0   :  { %s1033_s16 = smov [#allocation4]   ;;  %s1409_s0 = inlined_call_operand.vmem [shape: s32[32], index: 0, kind: input, shape index: {}]   ;;  %s1410_s1 = inlined_call_operand.vmem [shape: f32[50,32], index: 1, kind: input, shape index: {}]   ;;  %s1411_s2 = inlined_call_operand.vmem [shape: bf16[96,16], index: 2, kind: input, shape index: {}]   ;;  %s1412_s3 = inlined_call_operand.vmem [shape: f32[1,16], index: 3, kind: input, shape index: {}]   ;;  %s1413_s4 = inlined_call_operand.vmem [shape: bf16[128,16], index: 4, kind: input, shape index: {}]   ;;  %s1414_s5 = inlined_call_operand.vmem [shape: f32[1,16], index: 5, kind: input, shape index: {}]   ;;  %s1415_s6 = inlined_call_operand.vmem [shape: bf16[160,16], index: 6, kind: input, shape index: {}]   ;;  %s1416_s7 = inlined_call_operand.vmem [shape: f32[1,16], index: 7, kind: input, shape index: {}]   ;;  %s1417_s8 = inlined_call_operand.vmem [shape: bf16[48,128], index: 8, kind: input, shape index: {}]   ;;  %s1418_s9 = inlined_call_operand.vmem [shape: f32[1,128], index: 9, kind: input, shape index: {}]   ;;  %s1419_s10 = inlined_call_operand.hbm [shape: f32[2,128], index: 10, kind: output, shape index: {}]  }
   0x1   :  { %s16_s15 = sshll.u32 %s1409_s0, 4  ;;  %s17_s15 = int_to_ptr.vmem [resolvable:$true] %s16_s15 }
   0x2   :  { %19 = dma.vmem_to_smem %s17_s15, 16, %s1033_s16, [#allocation3] }
   0x3   :  { %1029 = dma.done.wait [#allocation3], 16 }
   0x4   :  { %1030 = vsyncadd [#allocation3], 4294967280 }
   0x5   :  { %22 = sfence }
   0x6   :  { %s43_s17 = sld [smem:[#allocation4]] }
   0x7   :  { %s777_s18 = sld [smem:[#allocation4 + $0x1]] }
   0x8   :  { %s778_s19 = sld [smem:[#allocation4 + $0x2]] }
   0x9   :  { %s779_s20 = sld [smem:[#allocation4 + $0x3]] }
   0xa   :  { %23 = vsyncpa [#allocation6], 0  ;;  %s780_s21 = sld [smem:[#allocation4 + $0x4]]  ;;  %vm46_vm0 = vcmask 253952   ;;  %vm180_vm1 = vcmask 1046528   ;;  %vm334_vm2 = vcmask 1044480  }
   0xb   :  { %s781_s22 = sld [smem:[#allocation4 + $0x5]]  ;;  %v936_v30 = vld [vmem:[%s1413_s4 + $0x38] sm:$0xff]  ;;  %v935_v32 = vld [vmem:[%s1413_s4 + $0x30] sm:$0xff]  ;;  %v928_v35 = vld [vmem:[%s1411_s2 + $0x28] sm:$0xff]  ;;  %vm200_vm3 = vcmask 1045504   ;;  %vm469_vm4 = vcmask 1043456  }
   0xc   :  { %s44_s25 = scalar_lea.vmem %s1410_s1, %s43_s17  ;;  %s782_s26 = sld [smem:[#allocation4 + $0x6]]  ;;  %v944_v31 = vld [vmem:[%s1415_s6 + $0x38] sm:$0xff]  ;;  %v943_v34 = vld [vmem:[%s1415_s6 + $0x30] sm:$0xff]  ;;  %424 = vmatpush.bf16.msra.mxu1 %v936_v30  ;;  %289 = vmatpush.bf16.msra.mxu0 %v928_v35  ;;  %v927_v38 = vld [vmem:[%s1411_s2 + $0x20] sm:$0xff]  ;;  %vm220_vm5 = vcmask 261120   ;;  %vm225_vm6 = vcmask 523264  }
   0xd   :  { %v45_v0 = vld [vmem:[%s44_s25] sm:$0x1]  ;;  %s49_s28 = scalar_lea.vmem %s1410_s1, %s777_s18  ;;  %s783_s29 = sld [smem:[#allocation4 + $0x7]]  ;;  %569 = vmatpush.bf16.msra.mxu2 %v944_v31  ;;  %v934_v45 = vld [vmem:[%s1413_s4 + $0x28] sm:$0xff]  ;;  %v926_v54 = vld [vmem:[%s1411_s2 + $0x18] sm:$0xff]  ;;  %vm280_vm7 = vcmask 785408  }
   0xe   :  { %47 = vst.msk [vmem:[#allocation2] sm:$0x1] %vm46_vm0, %v45_v0  ;;  %v50_v1 = vld [vmem:[%s49_s28] sm:$0x1]  ;;  %s53_s12 = scalar_lea.vmem %s1410_s1, %s778_s19  ;;  %s784_s13 = sld [smem:[#allocation4 + $0x8]]  ;;  %v942_v46 = vld [vmem:[%s1415_s6 + $0x28] sm:$0xff] }
   0xf   :  { %51 = vst.msk [vmem:[#allocation2 + $0x1] sm:$0x1] %vm46_vm0, %v50_v1  ;;  %v54_v2 = vld [vmem:[%s53_s12] sm:$0x1]  ;;  %s57_s16 = scalar_lea.vmem %s1410_s1, %s779_s20  ;;  %s785_s17 = sld [smem:[#allocation4 + $0x9]]  ;;  %v932_v63 = vld [vmem:[%s1413_s4 + $0x18] sm:$0xff] }
  0x10   :  { %55 = vst.msk [vmem:[#allocation2 + $0x2] sm:$0x1] %vm46_vm0, %v54_v2  ;;  %v58_v3 = vld [vmem:[%s57_s16] sm:$0x1]  ;;  %s61_s24 = scalar_lea.vmem %s1410_s1, %s780_s21  ;;  %s786_s25 = sld [smem:[#allocation4 + $0xa]]  ;;  %425 = vmatpush.bf16.msra.mxu1 %v935_v32  ;;  %290 = vmatpush.bf16.msra.mxu0 %v927_v38  ;;  %v940_v0 = vld [vmem:[%s1415_s6 + $0x18] sm:$0xff] }
  0x11   :  { %59 = vst.msk [vmem:[#allocation2 + $0x3] sm:$0x1] %vm46_vm0, %v58_v3  ;;  %v62_v4 = vld [vmem:[%s61_s24] sm:$0x1]  ;;  %s65_s27 = scalar_lea.vmem %s1410_s1, %s781_s22  ;;  %s787_s28 = sld [smem:[#allocation4 + $0xb]]  ;;  %570 = vmatpush.bf16.msra.mxu2 %v943_v34  ;;  %vm308_vm8 = vcmask 128000  }
  0x12   :  { %63 = vst.msk [vmem:[#allocation2 + $0x4] sm:$0x1] %vm46_vm0, %v62_v4  ;;  %v66_v5 = vld [vmem:[%s65_s27] sm:$0x1]  ;;  %s69_s11 = scalar_lea.vmem %s1410_s1, %s782_s26  ;;  %s788_s12 = sld [smem:[#allocation4 + $0xc]]  ;;  %vm444_vm9 = vcmask 126976  }
  0x13   :  { %67 = vst.msk [vmem:[#allocation2 + $0x5] sm:$0x1] %vm46_vm0, %v66_v5  ;;  %v70_v6 = vld [vmem:[%s69_s11] sm:$0x1]  ;;  %s73_s15 = scalar_lea.vmem %s1410_s1, %s783_s29  ;;  %s789_s16 = sld [smem:[#allocation4 + $0xd]]  ;;  %vm306_vm10 = vcmask 130048  }
  0x14   :  { %71 = vst.msk [vmem:[#allocation2 + $0x6] sm:$0x1] %vm46_vm0, %v70_v6  ;;  %v74_v7 = vld [vmem:[%s73_s15] sm:$0x1]  ;;  %s77_s23 = scalar_lea.vmem %s1410_s1, %s784_s13  ;;  %s790_s24 = sld [smem:[#allocation4 + $0xe]]  ;;  %426 = vmatpush.bf16.msra.mxu1 %v934_v45  ;;  %291 = vmatpush.bf16.msra.mxu0 %v926_v54  ;;  %vm608_vm11 = vcmask 125952  }
  0x15   :  { %75 = vst.msk [vmem:[#allocation2 + $0x7] sm:$0x1] %vm46_vm0, %v74_v7  ;;  %v78_v8 = vld [vmem:[%s77_s23] sm:$0x1]  ;;  %s81_s0 = scalar_lea.vmem %s1410_s1, %s785_s17  ;;  %s791_s27 = sld [smem:[#allocation4 + $0xf]]  ;;  %571 = vmatpush.bf16.msra.mxu2 %v942_v46  ;;  %vm326_vm12 = vcmask 1040384  }
  0x16   :  { %79 = vst.msk [vmem:[#allocation2 + $0x8] sm:$0x1] %vm46_vm0, %v78_v8  ;;  %v82_v9 = vld [vmem:[%s81_s0] sm:$0x1]  ;;  %s85_s30 = scalar_lea.vmem %s1410_s1, %s786_s25  ;;  %s792_s11 = sld [smem:[#allocation4 + $0x10]]  ;;  %vm714_vm13 = vcmask 1041408  }
  0x17   :  { %83 = vst.msk [vmem:[#allocation2 + $0x9] sm:$0x1] %vm46_vm0, %v82_v9  ;;  %v86_v10 = vld [vmem:[%s85_s30] sm:$0x1]  ;;  %s89_s14 = scalar_lea.vmem %s1410_s1, %s787_s28  ;;  %s793_s15 = sld [smem:[#allocation4 + $0x11]] }
  0x18   :  { %87 = vst.msk [vmem:[#allocation2 + $0xa] sm:$0x1] %vm46_vm0, %v86_v10  ;;  %v90_v11 = vld [vmem:[%s89_s14] sm:$0x1]  ;;  %s93_s18 = scalar_lea.vmem %s1410_s1, %s788_s12  ;;  %s794_s23 = sld [smem:[#allocation4 + $0x12]] }
  0x19   :  { %91 = vst.msk [vmem:[#allocation2 + $0xb] sm:$0x1] %vm46_vm0, %v90_v11  ;;  %v94_v12 = vld [vmem:[%s93_s18] sm:$0x1]  ;;  %s97_s19 = scalar_lea.vmem %s1410_s1, %s789_s16  ;;  %s795_s0 = sld [smem:[#allocation4 + $0x13]] }
  0x1a   :  { %95 = vst.msk [vmem:[#allocation2 + $0xc] sm:$0x1] %vm46_vm0, %v94_v12  ;;  %v98_v13 = vld [vmem:[%s97_s19] sm:$0x1]  ;;  %s101_s20 = scalar_lea.vmem %s1410_s1, %s790_s24  ;;  %s796_s30 = sld [smem:[#allocation4 + $0x14]]  ;;  %v925_v12 = vld [vmem:[%s1411_s2 + $0x10] sm:$0xff] }
  0x1b   :  { %99 = vst.msk [vmem:[#allocation2 + $0xd] sm:$0x1] %vm46_vm0, %v98_v13  ;;  %v102_v14 = vld [vmem:[%s101_s20] sm:$0x1]  ;;  %s105_s21 = scalar_lea.vmem %s1410_s1, %s791_s27  ;;  %s797_s14 = sld [smem:[#allocation4 + $0x15]]  ;;  %v931_v13 = vld [vmem:[%s1413_s4 + $0x10] sm:$0xff]  ;;  %292 = vmatpush.bf16.msra.mxu0 %v925_v12 }
  0x1c   :  { %103 = vst.msk [vmem:[#allocation2 + $0xe] sm:$0x1] %vm46_vm0, %v102_v14  ;;  %v106_v15 = vld [vmem:[%s105_s21] sm:$0x1]  ;;  %s109_s22 = scalar_lea.vmem %s1410_s1, %s792_s11  ;;  %s798_s18 = sld [smem:[#allocation4 + $0x16]]  ;;  %v939_v14 = vld [vmem:[%s1415_s6 + $0x10] sm:$0xff] }
  0x1d   :  { %107 = vst.msk [vmem:[#allocation2 + $0xf] sm:$0x1] %vm46_vm0, %v106_v15  ;;  %v110_v16 = vld [vmem:[%s109_s22] sm:$0x1]  ;;  %s113_s26 = scalar_lea.vmem %s1410_s1, %s793_s15  ;;  %s799_s19 = sld [smem:[#allocation4 + $0x17]]  ;;  %v924_v15 = vld [vmem:[%s1411_s2 + $0x8] sm:$0xff] }
  0x1e   :  { %111 = vst.msk [vmem:[#allocation2 + $0x10] sm:$0x1] %vm46_vm0, %v110_v16  ;;  %v114_v17 = vld [vmem:[%s113_s26] sm:$0x1]  ;;  %s117_s29 = scalar_lea.vmem %s1410_s1, %s794_s23  ;;  %s800_s22 = sld [smem:[#allocation4 + $0x18]]  ;;  %v930_v16 = vld [vmem:[%s1413_s4 + $0x8] sm:$0xff] }
  0x1f   :  { %115 = vst.msk [vmem:[#allocation2 + $0x11] sm:$0x1] %vm46_vm0, %v114_v17  ;;  %v118_v18 = vld [vmem:[%s117_s29] sm:$0x1]  ;;  %s121_s12 = scalar_lea.vmem %s1410_s1, %s795_s0  ;;  %s801_s26 = sld [smem:[#allocation4 + $0x19]]  ;;  %v938_v17 = vld [vmem:[%s1415_s6 + $0x8] sm:$0xff]  ;;  %293 = vmatpush.bf16.msra.mxu0 %v924_v15 }
  0x20   :  { %119 = vst.msk [vmem:[#allocation2 + $0x12] sm:$0x1] %vm46_vm0, %v118_v18  ;;  %v122_v19 = vld [vmem:[%s121_s12] sm:$0x1]  ;;  %s125_s21 = scalar_lea.vmem %s1410_s1, %s796_s30  ;;  %s1192_s29 = sld [smem:[#allocation4 + $0x1a]]  ;;  %v946_v18 = vld [vmem:[%s1415_s6 + $0x48] sm:$0xff] }
  0x21   :  { %123 = vst.msk [vmem:[#allocation2 + $0x13] sm:$0x1] %vm46_vm0, %v122_v19  ;;  %v126_v20 = vld [vmem:[%s125_s21] sm:$0x1]  ;;  %s129_s23 = scalar_lea.vmem %s1410_s1, %s797_s14  ;;  %s1201_s14 = sld [smem:[#allocation4 + $0x1b]]  ;;  %594 = vmatpush.bf16.msra.mxu3 %v946_v18 }
  0x22   :  { %v1182_v21 = vld [vmem:[#allocation2] sm:$0xff]  ;;  %127 = vst.msk [vmem:[#allocation2 + $0x14] sm:$0x1] %vm46_vm0, %v126_v20  ;;  %s133_s25 = scalar_lea.vmem %s1410_s1, %s798_s18  ;;  %s1207_s20 = sld [smem:[#allocation4 + $0x1c]] }
  0x23   :  { %v130_v22 = vld [vmem:[%s129_s23] sm:$0x1]  ;;  %s137_s28 = scalar_lea.vmem %s1410_s1, %s799_s19  ;;  %v181_v26 = vrot.slane %v1182_v21, 1  ;;  %v335_v28 = vrot.slane %v1182_v21, 3  ;;  %s1234_s12 = sld [smem:[#allocation4 + $0x1e]]  ;;  %v201_v47 = vrot.slane %v1182_v21, 2 }
  0x24   :  { %131 = vst.msk [vmem:[#allocation2 + $0x15] sm:$0x1] %vm46_vm0, %v130_v22  ;;  %v134_v23 = vld [vmem:[%s133_s25] sm:$0x1]  ;;  %v1195_v25 = vld [vmem:[#allocation2 + $0x8] sm:$0xff]  ;;  %s141_s11 = scalar_lea.vmem %s1410_s1, %s800_s22  ;;  %s1221_s22 = sld [smem:[#allocation4 + $0x1d]] }
  0x25   :  { %135 = vst.msk [vmem:[#allocation2 + $0x16] sm:$0x1] %vm46_vm0, %v134_v23  ;;  %v138_v24 = vld [vmem:[%s137_s28] sm:$0x1]  ;;  %v182_v27 = vrot.slane %v1195_v25, 1  ;;  %v336_v29 = vrot.slane %v1195_v25, 3  ;;  %s145_s24 = scalar_lea.vmem %s1410_s1, %s801_s26 }
  0x26   :  { %139 = vst.msk [vmem:[#allocation2 + $0x17] sm:$0x1] %vm46_vm0, %v138_v24  ;;  %v142_v33 = vld [vmem:[%s141_s11] sm:$0x1]  ;;  %s149_s11 = scalar_lea.vmem %s1410_s1, %s1192_s29  ;;  %s1237_s26 = sld [smem:[#allocation4 + $0x1f]]  ;;  %v202_v48 = vrot.slane %v1195_v25, 2 }
  0x27   :  { %143 = vst.msk [vmem:[#allocation2 + $0x18] sm:$0x1] %vm46_vm0, %v142_v33  ;;  %v146_v36 = vld [vmem:[%s145_s24] sm:$0x1]  ;;  %s153_s16 = scalar_lea.vmem %s1410_s1, %s1201_s14  ;;  %v183_v40 = vsel %vm180_vm1, %v181_v26, %v182_v27  ;;  %v337_v42 = vsel %vm334_vm2, %v335_v28, %v336_v29  ;;  %s1035_s24 = smov 96   ;;  %v470_v24 = vrot.slane %v1182_v21, 4 }
  0x28   :  { %147 = vst.msk [vmem:[#allocation2 + $0x19] sm:$0x1] %vm46_vm0, %v146_v36  ;;  %v150_v37 = vld [vmem:[%s149_s11] sm:$0x1]  ;;  %s157_s0 = scalar_lea.vmem %s1410_s1, %s1207_s20  ;;  %v203_v61 = vsel %vm200_vm3, %v201_v47, %v202_v48  ;;  %s1036_s30 = smov 64   ;;  %v471_v26 = vrot.slane %v1195_v25, 4 }
  0x29   :  { %151 = vst.msk [vmem:[#allocation2 + $0x1a] sm:$0x1] %vm46_vm0, %v150_v37  ;;  %v154_v44 = vld [vmem:[%s153_s16] sm:$0x1]  ;;  %s165_s11 = scalar_lea.vmem %s1410_s1, %s1234_s12 }
  0x2a   :  { %155 = vst.msk [vmem:[#allocation2 + $0x1b] sm:$0x1] %vm46_vm0, %v154_v44  ;;  %v158_v49 = vld [vmem:[%s157_s0] sm:$0x1]  ;;  %s161_s28 = scalar_lea.vmem %s1410_s1, %s1221_s22  ;;  %s1034_s0 = smov 32   ;;  %v472_v28 = vsel %vm469_vm4, %v470_v24, %v471_v26 }
  0x2b   :  { %159 = vst.msk [vmem:[#allocation2 + $0x1c] sm:$0x1] %vm46_vm0, %v158_v49  ;;  %v162_v53 = vld [vmem:[%s161_s28] sm:$0x1] }
  0x2c   :  { %163 = vst.msk [vmem:[#allocation2 + $0x1d] sm:$0x1] %vm46_vm0, %v162_v53  ;;  %v166_v57 = vld [vmem:[%s165_s11] sm:$0x1]  ;;  %s169_s21 = scalar_lea.vmem %s1410_s1, %s1237_s26 }
  0x2d   :  { %v1243_v39 = vld [vmem:[#allocation2 + $0x10] sm:$0xff]  ;;  %167 = vst.msk [vmem:[#allocation2 + $0x1e] sm:$0x1] %vm46_vm0, %v166_v57  ;;  %v170_v58 = vld [vmem:[%s169_s21] sm:$0x1]  ;;  %s736_s21 = sshll.u32 %s1419_s10, 4  ;;  %s737_s21 = int_to_ptr.hbm [resolvable:$true] %s736_s21 }
  0x2e   :  { %v184_v41 = vrot.slane %v1243_v39, 1  ;;  %v338_v43 = vrot.slane %v1243_v39, 3  ;;  %v204_v52 = vrot.slane %v1243_v39, 2  ;;  %v933_v59 = vld [vmem:[%s1413_s4 + $0x20] sm:$0xff]  ;;  %171 = vst.msk [vmem:[#allocation2 + $0x1f] sm:$0x1] %vm46_vm0, %v170_v58 }
  0x2f   :  { %v941_v60 = vld [vmem:[%s1415_s6 + $0x20] sm:$0xff]  ;;  %427 = vmatpush.bf16.msra.mxu1 %v933_v59 }
  0x30   :  { %v185_v50 = vsel %vm180_vm1, %v182_v27, %v184_v41  ;;  %v339_v51 = vsel %vm334_vm2, %v336_v29, %v338_v43  ;;  %v205_v62 = vsel %vm200_vm3, %v202_v48, %v204_v52  ;;  %572 = vmatpush.bf16.msra.mxu2 %v941_v60  ;;  %v923_v19 = vld [vmem:[%s1411_s2] sm:$0xff]  ;;  %v473_v27 = vrot.slane %v1243_v39, 4 }
  0x31   :  { %v955_v55 = vpack.i.bf16 %v185_v50, %v183_v40  ;;  %v965_v56 = vpack.i.bf16 %v339_v51, %v337_v42  ;;  %v960_v1 = vpack.i.bf16 %v205_v62, %v203_v61  ;;  %v929_v20 = vld [vmem:[%s1413_s4] sm:$0xff]  ;;  %294 = vmatpush.bf16.msra.mxu0 %v923_v19  ;;  %v949_v19 = vld [vmem:[%s1417_s8 + $0x10] sm:$0xff] }
  0x32   :  { %v937_v22 = vld [vmem:[%s1415_s6] sm:$0xff]  ;;  %v474_v29 = vsel %vm469_vm4, %v471_v26, %v473_v27 }
  0x33   :  { %956 = vrot.lane.b32.xlu0 %v955_v55, %s1034_s0  ;;  %966 = vrot.lane.b32.xlu1 %v965_v56, %s1035_s24  ;;  %v945_v23 = vld [vmem:[%s1415_s6 + $0x40] sm:$0xff]  ;;  %v481_v30 = vpack.c.bf16 %v474_v29, %v472_v28 }
  0x34   :  { %428 = vmatpush.bf16.msra.mxu1 %v932_v63  ;;  %573 = vmatpush.bf16.msra.mxu2 %v940_v0 }
  0x35   :  { %v1302_v2 = vld [vmem:[#allocation2 + $0x18] sm:$0xff]  ;;  %595 = vmatpush.bf16.msra.mxu3 %v945_v23 }
  0x36   :  { %v186_v3 = vrot.slane %v1302_v2, 1  ;;  %v206_v4 = vrot.slane %v1302_v2, 2  ;;  %v340_v7 = vrot.slane %v1302_v2, 3  ;;  %v475_v31 = vrot.slane %v1302_v2, 4 }
  0x38   :  { %v187_v5 = vsel %vm180_vm1, %v184_v41, %v186_v3  ;;  %v207_v6 = vsel %vm200_vm3, %v204_v52, %v206_v4  ;;  %v341_v10 = vsel %vm334_vm2, %v338_v43, %v340_v7  ;;  %429 = vmatpush.bf16.msra.mxu1 %v931_v13  ;;  %574 = vmatpush.bf16.msra.mxu2 %v939_v14 }
  0x39   :  { %v970_v8 = vpack.i.bf16 %v186_v3, %v187_v5  ;;  %v975_v9 = vpack.i.bf16 %v206_v4, %v207_v6  ;;  %v980_v11 = vpack.i.bf16 %v340_v7, %v341_v10  ;;  %906 = vmatmul.msk.bf16.vlgmr.msra.gmra.mxu3 %vm220_vm5, %v481_v30  ;;  %v476_v32 = vsel %vm469_vm4, %v473_v27, %v475_v31  ;;  %v947_v10 = vld [vmem:[%s1417_s8] sm:$0xff] }
  0x3a   :  { %v482_v33 = vpack.c.bf16 %v475_v31, %v476_v32  ;;  %679 = vmatpush.bf16.msrb.mxu0 %v947_v10 }
  0x3b   :  { %961 = vrot.lane.b32.xlu0 %v960_v1, %s1036_s30  ;;  %971 = vrot.lane.b32.xlu1 %v970_v8, %s1034_s0 }
  0x3c   :  { %976 = vrot.lane.b32.xlu2 %v975_v9, %s1036_s30  ;;  %430 = vmatpush.bf16.msra.mxu1 %v930_v16 }
  0x3d   :  { %575 = vmatpush.bf16.msra.mxu2 %v938_v17 }
  0x40   :  { %431 = vmatpush.bf16.msra.mxu1 %v929_v20 }
  0x41   :  { %576 = vmatpush.bf16.msra.mxu2 %v937_v22 }
  0x44   :  { %981 = vrot.lane.b32.xlu2 %v980_v11, %s1035_s24 }
  0x49   :  { %907 = vmatmul.msk.bf16.gmra.mxu3 %vm220_vm5, %v482_v33 }
  0x96   :  { %v977_v44 = vpop.permute.xlu2 %976 }
  0x97   :  { %v979_v55 = vunpack.i.h.bf16 %v977_v44  ;;  %v978_v56 = vunpack.i.l.bf16 %v977_v44 }
  0xa5   :  { %v957_v34 = vpop.permute.xlu0 %956  ;;  %v967_v35 = vpop.permute.xlu1 %966 }
  0xa6   :  { %v959_v36 = vunpack.i.h.bf16 %v957_v34  ;;  %v958_v37 = vunpack.i.l.bf16 %v957_v34  ;;  %v969_v38 = vunpack.i.h.bf16 %v967_v35  ;;  %v968_v40 = vunpack.i.l.bf16 %v967_v35 }
  0xa8   :  { %v222_v45 = vsel %vm220_vm5, %v1195_v25, %v959_v36  ;;  %v221_v46 = vsel %vm220_vm5, %v1182_v21, %v958_v37  ;;  %v982_v21 = vpop.permute.xlu2 %981 }
  0xa9   :  { %v984_v59 = vunpack.i.h.bf16 %v982_v21  ;;  %v983_v60 = vunpack.i.l.bf16 %v982_v21 }
  0xad   :  { %v962_v41 = vpop.permute.xlu0 %961  ;;  %v972_v53 = vpop.permute.xlu1 %971 }
  0xae   :  { %v964_v42 = vunpack.i.h.bf16 %v962_v41  ;;  %v963_v43 = vunpack.i.l.bf16 %v962_v41  ;;  %v974_v54 = vunpack.i.h.bf16 %v972_v53  ;;  %v973_v25 = vunpack.i.l.bf16 %v972_v53 }
  0xb0   :  { %v226_v47 = vsel %vm225_vm6, %v221_v46, %v963_v43  ;;  %v227_v48 = vsel %vm225_vm6, %v222_v45, %v964_v42  ;;  %v224_v57 = vsel %vm220_vm5, %v1302_v2, %v974_v54  ;;  %v223_v58 = vsel %vm220_vm5, %v1243_v39, %v973_v25  ;;  %v948_v39 = vld [vmem:[%s1417_s8 + $0x8] sm:$0xff] }
  0xb1   :  { %v230_v49 = vpack.c.bf16 %v227_v48, %v226_v47  ;;  %v354_v50 = vsel %vm280_vm7, %v226_v47, %v968_v40  ;;  %v355_v51 = vsel %vm280_vm7, %v227_v48, %v969_v38  ;;  %v228_v61 = vsel %vm225_vm6, %v223_v58, %v978_v56  ;;  %657 = vmatpush.bf16.msrb.mxu3 %v948_v39  ;;  %v985_v39 = vld [vmem:[%s1412_s3] ss:$0 sm:$0xff] }
  0xb2   :  { %v358_v52 = vpack.c.bf16 %v355_v51, %v354_v50  ;;  %v229_v62 = vsel %vm225_vm6, %v224_v57, %v979_v55  ;;  %v356_v63 = vsel %vm280_vm7, %v228_v61, %v983_v60 }
  0xb3   :  { %832 = vmatmul.msk.bf16.vlgmr.msra.gmra.mxu0 %vm280_vm7, %v230_v49  ;;  %v357_v0 = vsel %vm280_vm7, %v229_v62, %v984_v59  ;;  %v231_v1 = vpack.c.bf16 %v229_v62, %v228_v61 }
  0xb4   :  { %432 = vmatmul.bf16.vlgmr.msra.gmra.mxu1 %v358_v52  ;;  %577 = vmatmul.bf16.vlgmr.msra.gmra.mxu2 %v358_v52  ;;  %v359_v3 = vpack.c.bf16 %v357_v0, %v356_v63 }
  0xb5   :  { %702 = vmatpush.bf16.msra.mxu3 %v949_v19 }
  0xbc   :  { %v597_v2 = vpop.f32.mrf.mxu3 }
  0xc3   :  { %833 = vmatmul.msk.bf16.gmra.mxu0 %vm280_vm7, %v231_v1 }
  0xc4   :  { %437 = vmatmul.bf16.gmra.mxu1 %v359_v3  ;;  %582 = vmatmul.bf16.gmra.mxu2 %v359_v3  ;;  %v599_v9 = vpop.f32.mrf.mxu3 }
  0xcc   :  { %v602_v26 = vpop.f32.mrf.mxu3 }
  0xd4   :  { %v604_v48 = vpop.f32.mrf.mxu3 }
 0x130   :  { %v296_v4 = vpop.f32.mrf.mxu0 }
 0x131   :  { %v433_v5 = vpop.f32.mrf.mxu1  ;;  %v307_v13 = vsel %vm306_vm10, %v296_v4, -inf }
 0x132   :  { %v443_v14 = vsel %vm306_vm10, %v433_v5, -inf }
 0x137   :  { %v578_v6 = vpop.f32.mrf.mxu2 }
 0x138   :  { %v298_v7 = vpop.f32.mrf.mxu0  ;;  %v598_v27 = vadd.f32 %v597_v2, %v578_v6  ;;  %v986_v6 = vld [vmem:[%s1414_s5] ss:$0 sm:$0xff] }
 0x139   :  { %v435_v8 = vpop.f32.mrf.mxu1  ;;  %v309_v11 = vsel %vm308_vm8, %v298_v7, -inf }
 0x13a   :  { %v445_v12 = vsel %vm444_vm9, %v435_v8, -inf  ;;  %v310_v15 = vmax.f32 %v307_v13, %v309_v11  ;;  %v607_v32 = vsel %vm306_vm10, %v598_v27, -inf  ;;  %v987_v27 = vld [vmem:[%s1416_s7] ss:$0 sm:$0xff]  ;;  %s1037_s7 = smov [#allocation5]  }
 0x13b   :  { %v446_v16 = vmax.f32 %v443_v14, %v445_v12 }
 0x13c   :  { %v311_v22 = vrot.slane %v310_v15, 4 }
 0x13d   :  { %v447_v24 = vrot.slane %v446_v16, 4 }
 0x13e   :  { %v312_v28 = vmax.f32 %v310_v15, %v311_v22 }
 0x13f   :  { %v580_v17 = vpop.f32.mrf.mxu2  ;;  %v448_v30 = vmax.f32 %v446_v16, %v447_v24 }
 0x140   :  { %v301_v18 = vpop.f32.mrf.mxu0  ;;  %v600_v23 = vadd.f32 %v599_v9, %v580_v17  ;;  %v313_v38 = vrot.slane %v312_v28, 2 }
 0x141   :  { %v438_v20 = vpop.f32.mrf.mxu1  ;;  %v317_v35 = vsel %vm306_vm10, %v301_v18, -inf  ;;  %v449_v43 = vrot.slane %v448_v30, 2 }
 0x142   :  { %v609_v29 = vsel %vm608_vm11, %v600_v23, -inf  ;;  %v453_v40 = vsel %vm306_vm10, %v438_v20, -inf  ;;  %v314_v49 = vmax.f32 %v312_v28, %v313_v38 }
 0x143   :  { %v610_v34 = vmax.f32 %v607_v32, %v609_v29  ;;  %v450_v52 = vmax.f32 %v448_v30, %v449_v43 }
 0x144   :  { %v315_v57 = vrot.slane %v314_v49, 1 }
 0x145   :  { %v611_v46 = vrot.slane %v610_v34, 4  ;;  %v451_v61 = vrot.slane %v450_v52, 1 }
 0x146   :  { %v316_v4 = vmax.f32 %v314_v49, %v315_v57 }
 0x147   :  { %v583_v31 = vpop.f32.mrf.mxu2  ;;  %v612_v56 = vmax.f32 %v610_v34, %v611_v46  ;;  %v452_v7 = vmax.f32 %v450_v52, %v451_v61 }
 0x148   :  { %v303_v33 = vpop.f32.mrf.mxu0  ;;  %v603_v50 = vadd.f32 %v602_v26, %v583_v31 }
 0x149   :  { %v318_v36 = vsel %vm308_vm8, %v303_v33, -inf  ;;  %v440_v37 = vpop.f32.mrf.mxu1  ;;  %v613_v1 = vrot.slane %v612_v56, 2 }
 0x14a   :  { %v319_v41 = vmax.f32 %v317_v35, %v318_v36  ;;  %v454_v42 = vsel %vm444_vm9, %v440_v37, -inf  ;;  %v617_v58 = vsel %vm306_vm10, %v603_v50, -inf  ;;  %v988_v37 = vld [vmem:[%s1418_s9] ss:$0 sm:$0xff]  ;;  %s734_s9 = sshll.u32 %s1037_s7, 4  ;;  %s735_s9 = int_to_ptr.vmem [resolvable:$true] %s734_s9 }
 0x14b   :  { %v455_v44 = vmax.f32 %v453_v40, %v454_v42  ;;  %v614_v11 = vmax.f32 %v612_v56, %v613_v1 }
 0x14c   :  { %v320_v45 = vrot.slane %v319_v41, 4 }
 0x14d   :  { %v456_v47 = vrot.slane %v455_v44, 4  ;;  %v615_v19 = vrot.slane %v614_v11, 1 }
 0x14e   :  { %v321_v51 = vmax.f32 %v319_v41, %v320_v45 }
 0x14f   :  { %v457_v53 = vmax.f32 %v455_v44, %v456_v47  ;;  %v585_v54 = vpop.f32.mrf.mxu2  ;;  %v616_v26 = vmax.f32 %v614_v11, %v615_v19 }
 0x150   :  { %v322_v25 = vrot.slane %v321_v51, 2  ;;  %v605_v55 = vadd.f32 %v604_v48, %v585_v54 }
 0x151   :  { %v458_v21 = vrot.slane %v457_v53, 2 }
 0x152   :  { %v323_v59 = vmax.f32 %v321_v51, %v322_v25  ;;  %v618_v60 = vsel %vm608_vm11, %v605_v55, -inf }
 0x153   :  { %v459_v62 = vmax.f32 %v457_v53, %v458_v21  ;;  %v619_v63 = vmax.f32 %v617_v58, %v618_v60 }
 0x154   :  { %v324_v0 = vrot.slane %v323_v59, 1 }
 0x155   :  { %v460_v3 = vrot.slane %v459_v62, 1  ;;  %v620_v2 = vrot.slane %v619_v63, 4 }
 0x156   :  { %v325_v5 = vmax.f32 %v323_v59, %v324_v0 }
 0x157   :  { %v461_v8 = vmax.f32 %v459_v62, %v460_v3  ;;  %v621_v9 = vmax.f32 %v619_v63, %v620_v2 }
 0x158   :  { %v327_v10 = vsel %vm326_vm12, %v316_v4, %v325_v5 }
 0x159   :  { %v622_v12 = vrot.slane %v621_v9, 2  ;;  %v332_v13 = vadd.f32 %v985_v39, %v327_v10  ;;  %v462_v14 = vsel %vm326_vm12, %v452_v7, %v461_v8 }
 0x15a   :  { %v467_v15 = vadd.f32 %v986_v6, %v462_v14 }
 0x15b   :  { %v623_v16 = vmax.f32 %v621_v9, %v622_v12  ;;  %v333_v17 = vmax.f32 %v332_v13, 0.0 }
 0x15c   :  { %v468_v18 = vmax.f32 %v467_v15, 0.0 }
 0x15d   :  { %v624_v20 = vrot.slane %v623_v16, 1  ;;  %v639_v22 = vpack.c.bf16 %v333_v17, %v333_v17 }
 0x15e   :  { %v640_v23 = vpack.c.bf16 %v468_v18, %v468_v18 }
 0x15f   :  { %v625_v24 = vmax.f32 %v623_v16, %v624_v20  ;;  %917 = vmatmul.msk.bf16.vlgmr.msrb.gmra.mxu0 %vm306_vm10, %v639_v22 }
 0x160   :  { %912 = vmatmul.msk.bf16.vlgmr.msrb.gmra.mxu3 %vm306_vm10, %v640_v23 }
 0x161   :  { %v626_v28 = vsel %vm326_vm12, %v616_v26, %v625_v24 }
 0x162   :  { %v631_v29 = vadd.f32 %v987_v27, %v626_v28 }
 0x164   :  { %v632_v30 = vmax.f32 %v631_v29, 0.0 }
 0x166   :  { %v685_v31 = vpack.c.bf16 %v632_v30, %v632_v30 }
 0x170   :  { %922 = vmatmul.msk.bf16.vlgmr.msra.gmra.mxu3 %vm306_vm10, %v685_v31 }
 0x1dc   :  { %v681_v32 = vpop.f32.mrf.mxu0 }
 0x1e3   :  { %v659_v33 = vpop.f32.mrf.mxu3 }
 0x1e4   :  { %v683_v34 = vpop.f32.mrf.mxu0  ;;  %v682_v36 = vadd.f32 %v681_v32, %v659_v33 }
 0x1eb   :  { %v661_v35 = vpop.f32.mrf.mxu3 }
 0x1f3   :  { %v704_v38 = vpop.f32.mrf.mxu3 }
 0x1f4   :  { %v708_v40 = vadd.f32 %v704_v38, %v682_v36 }
 0x1f6   :  { %v713_v41 = vadd.f32 %v988_v37, %v708_v40 }
 0x1f8   :  { %v715_v42 = vsel %vm714_vm13, %v713_v41, -inf }
 0x1f9   :  { %716 = vmax.xlane.f32.xlu0 %v715_v42 }
 0x1fb   :  { %v706_v43 = vpop.f32.mrf.mxu3 }
 0x26c   :  { %v717_v44 = vpop.xlane.xlu0 %716 }
 0x26d   :  { %v718_v45 = vsub.f32 %v713_v41, %v717_v44 }
 0x26f   :  { %v719_v46 = vmul.f32 1.442695, %v718_v45 }
 0x271   :  { %989 = vpow2.f32 %v719_v46 }
 0x277   :  { %v990_v47 = vpop.eup %989 }
 0x278   :  { %v721_v48 = vsel %vm714_vm13, %v990_v47, 0.0 }
 0x279   :  { %722 = vadd.xlane.f32.xlu1 %v721_v48 }
 0x2ec   :  { %v723_v49 = vpop.xlane.xlu1 %722 }
 0x2ed   :  { %991 = vlog2.f32 %v723_v49 }
 0x2f3   :  { %v992_v50 = vpop.eup %991 }
 0x2f4   :  { %v725_v51 = vmul.f32 0.6931472, %v992_v50 }
 0x2f6   :  { %v726_v52 = vadd.f32 %v725_v51, %v717_v44 }
 0x2f8   :  { %v727_v53 = vsub.f32 %v713_v41, %v726_v52 }
 0x2fa   :  { %728 = vst [vmem:[#allocation5] sm:$0x3] %v727_v53 }
 0x2fb   :  { %739 = dma.vmem_to_hbm [thread:$0]  %s735_s9, 32, %s737_s21, [#allocation6]  }
 0x2fc   :  { %1031 = dma.done.wait [#allocation6], 32  }
 0x2fd   :  { %1032 = vsyncadd [#allocation6], 4294967264 }
 0x2fe   :  { %744 = vsyncpa [#allocation6], 1 }

</bundles_post_ra>
